<compile_context>
chip_gen: v7x
topology: tpu7x:2x2x1
jax: 0.10.0
libtpu: 0.0.40
codegen_flags: <defaults>
</compile_context>

<pallas_src>
import functools

import jax
import jax.numpy as jnp
from jax.experimental import pallas as pl
from jax.experimental.pallas import tpu as pltpu


def _seq_label_kernel(x_ref, w1_ref, b1_ref, wh_ref, bh_ref, out_ref):
    # Trunk: Linear(hidden -> half_pad) + bias + ReLU.  bf16 operands feed the
    # MXU natively; accumulation stays f32 via preferred_element_type.
    h = jnp.dot(x_ref[...], w1_ref[...], preferred_element_type=jnp.float32)
    h = jnp.maximum(h + b1_ref[...], 0.0)
    # dropout: identity (inference mode)

    # Fused heads: one lane-dense (half_pad x n_pad) matmul replaces the three
    # tiny head matmuls -> one MXU push, one unmasked output writeback.
    y = jnp.dot(h.astype(wh_ref.dtype), wh_ref[...],
                preferred_element_type=jnp.float32)
    out_ref[...] = (y + bh_ref[...]).astype(out_ref.dtype)


def _round_up(v, a):
    return ((v + a - 1) // a) * a


def _vmem_limit_bytes():
    """~75% of physical VMEM: 96 MiB on v5e/v6e (128 MiB), 48 MiB on v7x
    (64 MiB).  Falls back to the conservative v7x figure if the hardware
    query is unavailable."""
    try:
        cap = int(pltpu.get_tpu_info().vmem_capacity_bytes)
    except Exception:
        cap = 64 * 1024 * 1024
    return (cap * 3) // 4


def _choose_tm(m, per_row_db_bytes, resident_bytes, vmem_limit):
    """MXU-aligned row tile: >= 4 grid steps when m allows (>= 2 per TensorCore
    on 2-core parts), <= 1024 rows/step, VMEM-budgeted.  Raises instead of
    silently collapsing to a tiny tile."""
    headroom = 4 * 1024 * 1024  # compiler scratch / layout slack
    budget = vmem_limit - resident_bytes - headroom
    if budget <= 0:
        raise ValueError(
            f"Resident weights ({resident_bytes} B) do not fit the VMEM limit "
            f"({vmem_limit} B); K-tile the hidden axis or use narrower dtypes.")
    if m <= 8:
        return m
    # 256 fills the 256-wide MXU on v6e/v7x and is a multiple of v5e's 128.
    align = 256 if m >= 256 else (128 if m >= 128 else 8)
    tm = min(1024, max(align, _round_up(pl.cdiv(m, 4), align)))
    tm = min(tm, _round_up(m, align))
    max_tm = (budget // per_row_db_bytes) // align * align
    if max_tm < align:
        raise ValueError(
            f"VMEM budget ({budget} B) too small for even a {align}-row tile; "
            "raise the VMEM limit or use narrower dtypes.")
    return min(tm, max_tm)


@functools.partial(jax.jit,
                   static_argnames=("block_m", "compute_dtype", "out_dtype"))
def sequence_label_for_aos(x, params, block_m=None,
                           compute_dtype=jnp.bfloat16,
                           out_dtype=jnp.bfloat16):
    """x: (bs, seq_len, hidden). params: dict of (in, out)-layout weights/biases."""
    bs, seq_len, hidden = x.shape
    half = params["w1"].shape[1]
    tag = params["ws"].shape[1]
    tag1 = params["wq"].shape[1]
    n_heads = 2 * tag + tag1

    # Lane-dense zero-padding.  (Padding half to 256 would fill the full
    # v6e/v7x MXU width but costs extra HBM bytes on an HBM-bound kernel, so
    # we stop at 128.)
    n_pad = _round_up(n_heads, 128)
    half_pad = _round_up(half, 128)

    m = bs * seq_len
    x2d = x.reshape(m, hidden).astype(compute_dtype)

    # Trunk weight/bias, zero-padded on the output dim; bf16 weight, f32 bias.
    w1 = jnp.pad(params["w1"], ((0, 0), (0, half_pad - half))).astype(compute_dtype)
    b1 = jnp.pad(params["b1"], ((0, 0), (0, half_pad - half))).astype(jnp.float32)

    # Fuse + zero-pad the three heads into one (half_pad, n_pad) weight slab.
    wh = jnp.concatenate([params["ws"], params["wo"], params["wq"]], axis=1)
    bh = jnp.concatenate([params["bs"], params["bo"], params["bq"]], axis=1)
    wh = jnp.pad(wh, ((0, half_pad - half), (0, n_pad - n_heads))).astype(compute_dtype)
    bh = jnp.pad(bh, ((0, 0), (0, n_pad - n_heads))).astype(jnp.float32)

    x_isz = jnp.dtype(compute_dtype).itemsize
    w_isz = jnp.dtype(compute_dtype).itemsize
    o_isz = jnp.dtype(out_dtype).itemsize

    vmem_limit = _vmem_limit_bytes()
    resident = ((hidden * half_pad + half_pad * n_pad) * w_isz
                + (half_pad + n_pad) * 4)
    per_row_db = 2 * (hidden * x_isz + n_pad * o_isz)   # double-buffered x/out
    tm = block_m if block_m is not None else _choose_tm(
        m, per_row_db, resident, vmem_limit)
    grid = (pl.cdiv(m, tm),)

    const_spec = lambda shape: pl.BlockSpec(shape, lambda i: (0, 0))
    row_spec = lambda cols: pl.BlockSpec((tm, cols), lambda i: (i, 0))

    flops = 2 * m * hidden * half_pad + 2 * m * half_pad * n_pad
    bytes_accessed = m * hidden * x_isz + resident + m * n_pad * o_isz

    out = pl.pallas_call(
        _seq_label_kernel,
        out_shape=jax.ShapeDtypeStruct((m, n_pad), out_dtype),
        grid_spec=pltpu.PrefetchScalarGridSpec(
            num_scalar_prefetch=0,
            grid=grid,
            in_specs=[
                row_spec(hidden),                # x rows (pipelined)
                const_spec((hidden, half_pad)),  # trunk weight (resident)
                const_spec((1, half_pad)),       # trunk bias
                const_spec((half_pad, n_pad)),   # fused head weights
                const_spec((1, n_pad)),          # fused head bias
            ],
            out_specs=row_spec(n_pad),
        ),
        compiler_params=pltpu.CompilerParams(
            dimension_semantics=("parallel",),
            vmem_limit_bytes=int(vmem_limit)),
        cost_estimate=pl.CostEstimate(
            flops=int(flops), transcendentals=0,
            bytes_accessed=int(bytes_accessed)),
    )(x2d, w1, b1, wh, bh)

    # One pass over the padded slab, then split the tiny head column ranges.
    heads = out.reshape(bs, seq_len, n_pad)[..., :n_heads]
    sub = heads[..., 0:tag]
    obj = heads[..., tag:2 * tag]
    sen = heads[..., 2 * tag:n_heads]
    return sub, obj, sen


def init_params(key, hidden_size, tag_size):
    """Deterministic parameter init mirroring nn.Linear shapes.

    PyTorch nn.Linear(in, out) stores weight (out, in); here we keep the
    already-transposed (in, out) layout so the kernel does x @ W + b.
    """
    half = hidden_size // 2
    keys = jax.random.split(key, 8)

    def lin(kw, kb, fan_in, fan_out):
        bound = 1.0 / jnp.sqrt(fan_in)
        w = jax.random.uniform(kw, (fan_in, fan_out), jnp.float32, -bound, bound)
        b = jax.random.uniform(kb, (1, fan_out), jnp.float32, -bound, bound)
        return w, b

    w1, b1 = lin(keys[0], keys[1], hidden_size, half)
    ws, bs_ = lin(keys[2], keys[3], half, tag_size)
    wo, bo = lin(keys[4], keys[5], half, tag_size)
    wq, bq = lin(keys[6], keys[7], half, tag_size + 1)
    return dict(w1=w1, b1=b1, ws=ws, bs=bs_, wo=wo, bo=bo, wq=wq, bq=bq)


def reference(x, p, compute_dtype=jnp.bfloat16):
    """Pure-JAX reference mirroring the kernel's bf16 operand rounding."""
    cd = lambda a: a.astype(compute_dtype).astype(jnp.float32)
    h = jnp.maximum(cd(x) @ cd(p["w1"]) + p["b1"], 0.0)
    h = cd(h)
    return (h @ cd(p["ws"]) + p["bs"],
            h @ cd(p["wo"]) + p["bo"],
            h @ cd(p["wq"]) + p["bq"])


if __name__ == "__main__":
    bs, seq_len, hidden, tag_size = 2, 8, 32, 4
    key = jax.random.PRNGKey(0)
    kx, kp = jax.random.split(key)

    x = jax.random.normal(kx, (bs, seq_len, hidden), jnp.float32)
    params = init_params(kp, hidden, tag_size)

    sub, obj, sen = sequence_label_for_aos(x, params)
    jax.block_until_ready((sub, obj, sen))

    # sanity check against a pure-JAX reference (same bf16 operand rounding)
    r_sub, r_obj, r_sen = reference(x, params)
    assert sub.shape == (bs, seq_len, tag_size)
    assert obj.shape == (bs, seq_len, tag_size)
    assert sen.shape == (bs, seq_len, tag_size + 1)
    tol = dict(atol=2e-2, rtol=2e-2)
    assert jnp.allclose(sub.astype(jnp.float32), r_sub, **tol)
    assert jnp.allclose(obj.astype(jnp.float32), r_obj, **tol)
    assert jnp.allclose(sen.astype(jnp.float32), r_sen, **tol)

    print("KERNEL_OK")
</pallas_src>

<mosaic_0001>
module attributes {stable_mosaic.version = 11 : i64} {
  func.func @_seq_label_kernel(%arg0: i32, %arg1: memref<8x32xbf16, #tpu.memory_space<vmem>>, %arg2: memref<32x128xbf16, #tpu.memory_space<vmem>>, %arg3: memref<1x128xf32, #tpu.memory_space<vmem>>, %arg4: memref<128x128xbf16, #tpu.memory_space<vmem>>, %arg5: memref<1x128xf32, #tpu.memory_space<vmem>>, %arg6: memref<8x128xbf16, #tpu.memory_space<vmem>>) attributes {dimension_semantics = [#tpu.dimension_semantics<parallel>], iteration_bounds = array<i64: 2>, scalar_prefetch = 0 : i64, scratch_operands = 0 : i64, tpu.core_type = #tpu.core_type<tc>, window_params = [{transform_indices = @transform_0, window_bounds = array<i64: 8, 32>}, {pipeline_mode = #tpu.pipeline_mode<synchronous>, transform_indices = @transform_1, window_bounds = array<i64: 32, 128>}, {pipeline_mode = #tpu.pipeline_mode<synchronous>, transform_indices = @transform_2, window_bounds = array<i64: 1, 128>}, {pipeline_mode = #tpu.pipeline_mode<synchronous>, transform_indices = @transform_3, window_bounds = array<i64: 128, 128>}, {pipeline_mode = #tpu.pipeline_mode<synchronous>, transform_indices = @transform_4, window_bounds = array<i64: 1, 128>}, {transform_indices = @transform_5, window_bounds = array<i64: 8, 128>}]} {
    %c0 = arith.constant 0 : index
    %c0_0 = arith.constant 0 : index
    %0 = vector.load %arg1[%c0, %c0_0] : memref<8x32xbf16, #tpu.memory_space<vmem>>, vector<8x32xbf16>
    %c0_1 = arith.constant 0 : index
    %c0_2 = arith.constant 0 : index
    %1 = vector.load %arg2[%c0_1, %c0_2] : memref<32x128xbf16, #tpu.memory_space<vmem>>, vector<32x128xbf16>
    %cst = arith.constant dense<0.000000e+00> : vector<8x128xf32>
    %2 = tpu.matmul %0, %1, %cst {dimension_numbers = #tpu.dot_dimension_numbers<[1], [0], [0], [1], [0, 0, 1, 1], [], []>} : vector<8x32xbf16>, vector<32x128xbf16>, vector<8x128xf32> -> vector<8x128xf32>
    %c0_3 = arith.constant 0 : index
    %c0_4 = arith.constant 0 : index
    %3 = vector.load %arg3[%c0_3, %c0_4] : memref<1x128xf32, #tpu.memory_space<vmem>>, vector<1x128xf32>
    %4 = vector.broadcast %3 : vector<1x128xf32> to vector<8x128xf32>
    %5 = arith.addf %2, %4 : vector<8x128xf32>
    %cst_5 = arith.constant 0.000000e+00 : f32
    %6 = vector.broadcast %cst_5 : f32 to vector<8x128xf32>
    %7 = arith.maximumf %5, %6 : vector<8x128xf32>
    %8 = arith.truncf %7 : vector<8x128xf32> to vector<8x128xbf16>
    %c0_6 = arith.constant 0 : index
    %c0_7 = arith.constant 0 : index
    %9 = vector.load %arg4[%c0_6, %c0_7] : memref<128x128xbf16, #tpu.memory_space<vmem>>, vector<128x128xbf16>
    %cst_8 = arith.constant dense<0.000000e+00> : vector<8x128xf32>
    %10 = tpu.matmul %8, %9, %cst_8 {dimension_numbers = #tpu.dot_dimension_numbers<[1], [0], [0], [1], [0, 0, 1, 1], [], []>} : vector<8x128xbf16>, vector<128x128xbf16>, vector<8x128xf32> -> vector<8x128xf32>
    %c0_9 = arith.constant 0 : index
    %c0_10 = arith.constant 0 : index
    %11 = vector.load %arg5[%c0_9, %c0_10] : memref<1x128xf32, #tpu.memory_space<vmem>>, vector<1x128xf32>
    %12 = vector.broadcast %11 : vector<1x128xf32> to vector<8x128xf32>
    %13 = arith.addf %10, %12 : vector<8x128xf32>
    %14 = arith.truncf %13 : vector<8x128xf32> to vector<8x128xbf16>
    %c0_11 = arith.constant 0 : index
    %c0_12 = arith.constant 0 : index
    %15 = vector.load %arg6[%c0_11, %c0_12] : memref<8x128xbf16, #tpu.memory_space<vmem>>, vector<8x128xbf16>
    tpu.vector_store %arg6[%c0_11, %c0_12], %14 {strides = array<i32>} : memref<8x128xbf16, #tpu.memory_space<vmem>>, vector<8x128xbf16>,
    return
  }
  func.func @transform_0(%arg0: i32) -> (i32, i32) {
    %c0_i32 = arith.constant 0 : i32
    %c0_i32_0 = arith.constant 0 : i32
    return %arg0, %c0_i32 : i32, i32
  }
  func.func @transform_1(%arg0: i32) -> (i32, i32) {
    %c0_i32 = arith.constant 0 : i32
    %c0_i32_0 = arith.constant 0 : i32
    %c0_i32_1 = arith.constant 0 : i32
    return %c0_i32, %c0_i32_0 : i32, i32
  }
  func.func @transform_2(%arg0: i32) -> (i32, i32) {
    %c0_i32 = arith.constant 0 : i32
    %c0_i32_0 = arith.constant 0 : i32
    %c0_i32_1 = arith.constant 0 : i32
    return %c0_i32, %c0_i32_0 : i32, i32
  }
  func.func @transform_3(%arg0: i32) -> (i32, i32) {
    %c0_i32 = arith.constant 0 : i32
    %c0_i32_0 = arith.constant 0 : i32
    %c0_i32_1 = arith.constant 0 : i32
    return %c0_i32, %c0_i32_0 : i32, i32
  }
  func.func @transform_4(%arg0: i32) -> (i32, i32) {
    %c0_i32 = arith.constant 0 : i32
    %c0_i32_0 = arith.constant 0 : i32
    %c0_i32_1 = arith.constant 0 : i32
    return %c0_i32, %c0_i32_0 : i32, i32
  }
  func.func @transform_5(%arg0: i32) -> (i32, i32) {
    %c0_i32 = arith.constant 0 : i32
    %c0_i32_0 = arith.constant 0 : i32
    return %arg0, %c0_i32 : i32, i32
  }
}

</mosaic_0001>

<bundles_post_ra>
// kernel: sequence_label_for_aos.1
= control target key start
LH: loop header
LB: loop body
LE: loop exit
PB: predicated region body
PF: predicated region fallthrough
CT: control target
= control target key end

     0   :  { %s579_s18 = smov 0   ;;  %s639_s0 = inlined_call_operand.vmem [shape: bf16[16,32], index: 0, kind: input, shape index: {}]   ;;  %s640_s1 = inlined_call_operand.vmem [shape: bf16[32,128], index: 1, kind: input, shape index: {}]   ;;  %s641_s2 = inlined_call_operand.vmem [shape: f32[1,128], index: 2, kind: input, shape index: {}]   ;;  %s642_s3 = inlined_call_operand.vmem [shape: bf16[128,128], index: 3, kind: input, shape index: {}]   ;;  %s643_s4 = inlined_call_operand.vmem [shape: f32[1,128], index: 4, kind: input, shape index: {}]   ;;  %s644_s5 = inlined_call_operand.vmem [shape: bf16[16,128], index: 5, kind: output, shape index: {}]  }
   0x1 LB: > { %s457_s19 = sadd.s32 4294967295, %s545_s18   ;;  %p461_p0 = scmp.ge.s32.totalorder %s545_s18, 1  ;;  %s545_s18 = sphi %s579_s18, %s15_s18  }
   0x2   : > { %p186_p1 = scmp.lt.s32.totalorder %s545_s18, 3 }
   0x4   : > { %p187_p2 = pnand %p461_p0, %p186_p1 }
   0x5   : > { %v529_v0 = vld [vmem:[%s640_s1] sm:$0xff] (!%p187_p2)   ;;  %v547_v1 = vmov (!%p187_p2), 0.0   ;;  %v530_v2 = vld [vmem:[%s640_s1 + $0x8] sm:$0xff] (!%p187_p2)   ;;  %vm548_vm0 = vmmov (!%p187_p2), 0   ;;  %p212_p3 = scmp.lt.s32.totalorder (!%p187_p2), %s457_s19, 1  ;;  %vm245_vm1 = vcmask (!%p187_p2), 261120  }
   0x6   : > { %190 = sbr.rel (%p187_p2) target bundleno = 452 (0x1c4), region = 40  ;;  %491 = vmatprep.subr.bf16.mxu0 (!%p187_p2), %v547_v1  ;;  %499 = vmatprep.subr.bf16.mxu1 (!%p187_p2), %v547_v1  ;;  %v531_v3 = vld [vmem:[%s642_s3] sm:$0xff] (!%p187_p2)   ;;  %v532_v4 = vld [vmem:[%s642_s3 + $0x8] sm:$0xff] (!%p187_p2)   ;;  %v533_v6 = vld [vmem:[%s642_s3 + $0x10] sm:$0xff] (!%p187_p2)  }
   0x7   : > { %492 = vmatpush3.bf16.msra.mxu0 (!%p187_p2), %v529_v0  ;;  %495 = vmatprep.mubr.msk.bf16.mxu0 (!%p187_p2), %vm548_vm0, %v547_v1  ;;  %v534_v7 = vld [vmem:[%s642_s3 + $0x18] sm:$0xff] (!%p187_p2)   ;;  %v535_v8 = vld [vmem:[%s642_s3 + $0x20] sm:$0xff] (!%p187_p2)   ;;  %v536_v9 = vld [vmem:[%s642_s3 + $0x28] sm:$0xff] (!%p187_p2)  }
   0x8   : > { %493 = vmatprep.subr.bf16.mxu0 (!%p187_p2), %v547_v1  ;;  %515 = vmatprep.mubr.msk.bf16.mxu1 (!%p187_p2), %vm548_vm0, %v547_v1  ;;  %v537_v10 = vld [vmem:[%s642_s3 + $0x30] sm:$0xff] (!%p187_p2)   ;;  %v538_v11 = vld [vmem:[%s642_s3 + $0x38] sm:$0xff] (!%p187_p2)   ;;  %v464_v12 = vld [vmem:[%s641_s2] ss:$0 sm:$0xff] (!%p187_p2) }
   0x9   : > { %500 = vmatpush3.bf16.msra.mxu1 (!%p187_p2), %v531_v3  ;;  %v468_v20 = vld [vmem:[%s643_s4] ss:$0 sm:$0xff] (!%p187_p2) }
   0xa   : > { %501 = vmatprep.subr.bf16.mxu1 (!%p187_p2), %v547_v1 }
   0xb   : > { %494 = vmatpush3.bf16.msra.mxu0 (!%p187_p2), %v530_v2 }
   0xd   : > { %s646_s19 = smov (!%p212_p3, %s457_s19), 1  ;;  %502 = vmatpush3.bf16.msra.mxu1 %v532_v4 }
   0xe   : > { %s462_s28 = sshll.u32 %s646_s19, 2  ;;  %503 = vmatprep.subr.bf16.mxu1 %v547_v1 }
   0xf   : > { %s215_s6 = scalar_lea.vmem %s639_s0, %s462_s28  ;;  %s219_s27 = scalar_lea.vmem %s644_s5, %s462_s28 }
  0x10   : > { %v221_v5 = vld [vmem:[%s215_s6] sm:$0xf] }
  0x11   : > { %496 = vmatmul.mubr.msk.bf16.vlgmr.msra.gmra.mrb[0].mxu0 %vm245_vm1, %v221_v5  ;;  %504 = vmatpush3.bf16.msra.mxu1 %v533_v6 }
  0x12   : > { %505 = vmatprep.subr.bf16.mxu1 %v547_v1 }
  0x15   : > { %506 = vmatpush3.bf16.msra.mxu1 %v534_v7 }
  0x16   : > { %507 = vmatprep.subr.bf16.mxu1 %v547_v1 }
  0x19   : > { %508 = vmatpush3.bf16.msra.mxu1 %v535_v8 }
  0x1a   : > { %509 = vmatprep.subr.bf16.mxu1 %v547_v1 }
  0x1d   : > { %510 = vmatpush3.bf16.msra.mxu1 %v536_v9 }
  0x1e   : > { %511 = vmatprep.subr.bf16.mxu1 %v547_v1 }
  0x21   : > { %512 = vmatpush3.bf16.msra.mxu1 %v537_v10 }
  0x22   : > { %513 = vmatprep.subr.bf16.mxu1 %v547_v1 }
  0x25   : > { %514 = vmatpush3.bf16.msra.mxu1 %v538_v11 }
  0xe4   : > { %v283_v13 = vpop.f32.mrb[0].mxu0 }
  0xe5   : > { %v284_v14 = vadd.f32 %v464_v12, %v283_v13  ;;  %v497_v15 = vpop.f32.mrb[1].mxu0 }
  0xe6   : > { %v286_v16 = vpop.f32.mrb[2].mxu0 }
  0xe7   : > { %v289_v17 = vmax.f32 %v284_v14, 0.0  ;;  %v498_v18 = vpop.f32.mrb[3].mxu0 }
  0xe9   : > { %v290_v19 = vpack.c.bf16 %v289_v17, %v289_v17 }
  0xeb   : > { %516 = vmatmul.mubr.bf16.vlgmr.msra.gmra.mrb[0].mxu1 %v290_v19 }
 0x1be   : > { %v396_v21 = vpop.f32.mrb[0].mxu1 }
 0x1bf   : > { %v397_v22 = vadd.f32 %v468_v20, %v396_v21  ;;  %v517_v23 = vpop.f32.mrb[1].mxu1 }
 0x1c0   : > { %v399_v24 = vpop.f32.mrb[2].mxu1 }
 0x1c1   : > { %v402_v25 = vpack.c.bf16 %v397_v22, %v397_v22  ;;  %v518_v26 = vpop.f32.mrb[3].mxu1 }
 0x1c3   : > { %403 = vst [vmem:[%s219_s27] sm:$0xf] %v402_v25 }
 0x1c4 PF: > { %s15_s18 = sadd.s32 1, %s545_s18  }
 0x1c5   : > { %p12_p4 = scmp.ge.s32.totalorder %s15_s18, 4  }
 0x1c7   :  { %14 = sbr.rel (!%p12_p4) target bundleno = 1 (0x1), region = 70 }

</bundles_post_ra>
